<compile_context>
chip_gen: v7x
topology: tpu7x:2x2x1
jax: 0.10.0
libtpu: 0.0.40
codegen_flags: <defaults>
</compile_context>

<pallas_src>
import jax
import jax.numpy as jnp
import numpy as np
from jax.experimental import pallas as pl
from jax.experimental.pallas import tpu as pltpu

RANK = 32
NODES_PER_GRAPH = 5
BS = 16
N = BS * NODES_PER_GRAPH          # 80 nodes total
NUM_CLASSES = 8
MLP_LAYERS = 3
BN_EPS = 1e-5
LN_EPS = 1e-5

# Packed parameter-slab row indices (slab shape = (SLAB_ROWS, RANK)).
ROW_W_SEQ, ROW_B_SEQ = 0, 1
ROW_B_GIN = 2                     # rows 2, 3, 4 (GIN-MLP biases)
ROW_BN_G, ROW_BN_B = 5, 6
ROW_LN_G, ROW_LN_B = 7, 8
ROW_B_RO, ROW_B_PRED = 9, 10
SLAB_ROWS = 16                    # padded to two full sublane groups


def gnn_family_kernel(node_ref, slab_ref, wg_ref, wro_ref, wp_ref, out_ref):
    # ---- unpack parameter rows (lane axis = feature channels) ----------------
    w_seq = slab_ref[ROW_W_SEQ:ROW_W_SEQ + 1, :]          # (1, RANK)
    b_seq = slab_ref[ROW_B_SEQ:ROW_B_SEQ + 1, :]
    bn_g = slab_ref[ROW_BN_G:ROW_BN_G + 1, :]
    bn_b = slab_ref[ROW_BN_B:ROW_BN_B + 1, :]
    ln_g = slab_ref[ROW_LN_G:ROW_LN_G + 1, :]
    ln_b = slab_ref[ROW_LN_B:ROW_LN_B + 1, :]
    b_ro = slab_ref[ROW_B_RO:ROW_B_RO + 1, :]
    b_pred = slab_ref[ROW_B_PRED:ROW_B_PRED + 1, :NUM_CLASSES]   # (1, C)

    # ---- seq_encoder fused with GINConv 'sum' aggregation (eps = 0) ----------
    # h = f*w + b ;  agg = (1+eps)*h + A@h = (f + A@f) * w + (1 + deg) * b
    fsum = node_ref[:, 0:1]            # (N, 1)  feats + A @ feats
    dsum = node_ref[:, 1:2]            # (N, 1)  1 + degree
    x1 = fsum * w_seq + dsum * b_seq   # (N, RANK)

    # ---- GINMLP: 3 x (Linear + ReLU), static unroll ---------------------------
    for l in range(MLP_LAYERS):
        x1 = jnp.dot(x1, wg_ref[l], preferred_element_type=jnp.float32)
        x1 = x1 + slab_ref[ROW_B_GIN + l:ROW_B_GIN + l + 1, :]
        x1 = jnp.maximum(x1, 0.0)

    # ---- BatchNorm1d(rank): training-mode batch statistics (biased var) ------
    mu = jnp.mean(x1, axis=0, keepdims=True)
    var = jnp.mean((x1 - mu) * (x1 - mu), axis=0, keepdims=True)
    x2 = (x1 - mu) * jax.lax.rsqrt(var + BN_EPS) * bn_g + bn_b
    # GINMLP Dropout(p=0.0) is identity.

    # ---- LayerNorm(rank) over the feature axis --------------------------------
    mu2 = jnp.mean(x2, axis=-1, keepdims=True)
    var2 = jnp.mean((x2 - mu2) * (x2 - mu2), axis=-1, keepdims=True)
    x3 = (x2 - mu2) * jax.lax.rsqrt(var2 + LN_EPS) * ln_g + ln_b

    # ---- ReLU; Dropout(0.1) in eval mode -> identity ---------------------------
    x3 = jnp.maximum(x3, 0.0)

    # ---- readout Linear(rank, rank) --------------------------------------------
    r = jnp.dot(x3, wro_ref[...], preferred_element_type=jnp.float32) + b_ro   # (N, RANK)

    # ---- pred Linear(5*rank, C) ------------------------------------------------
    # Rows are node-major (node k occupies rows [k*BS, (k+1)*BS)), so the
    # reshape(bs, 5*rank) is just 5 contiguous row-block slices concatenated
    # along lanes -> a single K=160 matmul instead of 5 K=32 ones.
    stacked = jnp.concatenate(
        [r[k * BS:(k + 1) * BS, :] for k in range(NODES_PER_GRAPH)], axis=-1)   # (BS, 5*RANK)
    out_ref[...] = (
        jnp.dot(stacked, wp_ref[...], preferred_element_type=jnp.float32) + b_pred)


def gnn_family_forward(feats, adj, params):
    # GIN 'sum' aggregation reduced to per-node scalars in the wrapper:
    # since seq_encoder is Linear(1, rank), A @ h = (A @ f) * w + deg * b,
    # so only [f + A@f, 1 + deg] is needed inside the kernel (adj dropped).
    nf = jnp.dot(adj, feats)                              # (N, 1) neighbor-feature sum
    deg = jnp.sum(adj, axis=1, keepdims=True)             # (N, 1) node degrees
    node_in = jnp.concatenate([feats + nf, 1.0 + deg], axis=-1)   # (N, 2)
    # Node-major permutation (node k outer, graph b inner): every remaining op
    # is row-wise or a full-batch reduction, so this is semantics-preserving,
    # and it turns the pred reshape into static contiguous row blocks.
    node_in = (node_in.reshape(BS, NODES_PER_GRAPH, 2)
               .transpose(1, 0, 2).reshape(N, 2))

    vmem = pltpu.MemorySpace.VMEM
    return pl.pallas_call(
        gnn_family_kernel,
        out_shape=jax.ShapeDtypeStruct((BS, NUM_CLASSES), jnp.float32),
        in_specs=[pl.BlockSpec(memory_space=vmem) for _ in range(5)],
        out_specs=pl.BlockSpec(memory_space=vmem),
    )(node_in, params["slab"], params["w_gin"], params["w_ro"], params["w_pred"])


def make_params(key):
    ks = jax.random.split(key, 8)
    scale = 0.1
    w_seq = scale * jax.random.normal(ks[0], (1, RANK), jnp.float32)
    b_seq = scale * jax.random.normal(ks[1], (1, RANK), jnp.float32)
    w_gin = scale * jax.random.normal(ks[2], (MLP_LAYERS, RANK, RANK), jnp.float32)
    b_gin = scale * jax.random.normal(ks[3], (MLP_LAYERS, RANK), jnp.float32)
    w_ro = scale * jax.random.normal(ks[4], (RANK, RANK), jnp.float32)
    b_ro = scale * jax.random.normal(ks[5], (1, RANK), jnp.float32)
    w_pred = scale * jax.random.normal(
        ks[6], (NODES_PER_GRAPH, RANK, NUM_CLASSES), jnp.float32)
    b_pred = scale * jax.random.normal(ks[7], (1, NUM_CLASSES), jnp.float32)
    bn_g = jnp.ones((1, RANK), jnp.float32)
    bn_b = jnp.zeros((1, RANK), jnp.float32)
    ln_g = jnp.ones((1, RANK), jnp.float32)
    ln_b = jnp.zeros((1, RANK), jnp.float32)

    # Pack all tiny per-channel parameter rows into one (16, RANK) slab
    # -> a single input DMA instead of ten separate ones.
    slab = np.zeros((SLAB_ROWS, RANK), np.float32)
    slab[ROW_W_SEQ] = np.asarray(w_seq)[0]
    slab[ROW_B_SEQ] = np.asarray(b_seq)[0]
    slab[ROW_B_GIN:ROW_B_GIN + MLP_LAYERS] = np.asarray(b_gin)
    slab[ROW_BN_G] = np.asarray(bn_g)[0]
    slab[ROW_BN_B] = np.asarray(bn_b)[0]
    slab[ROW_LN_G] = np.asarray(ln_g)[0]
    slab[ROW_LN_B] = np.asarray(ln_b)[0]
    slab[ROW_B_RO] = np.asarray(b_ro)[0]
    slab[ROW_B_PRED, :NUM_CLASSES] = np.asarray(b_pred)[0]

    # Row block k of the flattened pred weight multiplies node k's readout,
    # matching the reshape(bs, 5*rank) column order of the torch forward.
    w_pred_flat = w_pred.reshape(NODES_PER_GRAPH * RANK, NUM_CLASSES)

    packed = {
        "slab": jnp.asarray(slab),
        "w_gin": w_gin,
        "w_ro": w_ro,
        "w_pred": w_pred_flat,
    }
    raw = {
        "w_seq": w_seq, "b_seq": b_seq,
        "w_gin": w_gin, "b_gin": b_gin,
        "bn_g": bn_g, "bn_b": bn_b, "ln_g": ln_g, "ln_b": ln_b,
        "w_ro": w_ro, "b_ro": b_ro,
        "w_pred_flat": w_pred_flat, "b_pred": b_pred,
    }
    return packed, raw


def make_graph(key):
    # Node scalar features, reshaped (-1, 1) as in the torch forward.
    feats = jax.random.normal(key, (N, 1), jnp.float32)
    # Per-graph 5-node ring adjacency (undirected, no self loops), block-diagonal batch.
    ring = np.zeros((NODES_PER_GRAPH, NODES_PER_GRAPH), dtype=np.float32)
    for j in range(NODES_PER_GRAPH):
        ring[j, (j + 1) % NODES_PER_GRAPH] = 1.0
        ring[j, (j - 1) % NODES_PER_GRAPH] = 1.0
    adj = np.kron(np.eye(BS, dtype=np.float32), ring)
    return feats, jnp.asarray(adj)


def reference_forward(feats, adj, raw):
    """Pure-JAX reference of the original (unfused, graph-major) math."""
    hi = jax.lax.Precision.HIGHEST
    h = jnp.dot(feats, raw["w_seq"], precision=hi) + raw["b_seq"]   # seq_encoder
    h = h + jnp.dot(adj, h, precision=hi)                            # GINConv 'sum', eps=0
    for l in range(MLP_LAYERS):
        h = jnp.maximum(jnp.dot(h, raw["w_gin"][l], precision=hi) + raw["b_gin"][l], 0.0)
    mu = h.mean(0, keepdims=True)
    var = ((h - mu) ** 2).mean(0, keepdims=True)
    h = (h - mu) / jnp.sqrt(var + BN_EPS) * raw["bn_g"] + raw["bn_b"]
    mu2 = h.mean(-1, keepdims=True)
    var2 = ((h - mu2) ** 2).mean(-1, keepdims=True)
    h = (h - mu2) / jnp.sqrt(var2 + LN_EPS) * raw["ln_g"] + raw["ln_b"]
    h = jnp.maximum(h, 0.0)
    h = jnp.dot(h, raw["w_ro"], precision=hi) + raw["b_ro"]
    h = h.reshape(BS, NODES_PER_GRAPH * RANK)
    return jnp.dot(h, raw["w_pred_flat"], precision=hi) + raw["b_pred"]


if __name__ == "__main__":
    key = jax.random.PRNGKey(0)
    k_graph, k_params = jax.random.split(key)
    feats, adj = make_graph(k_graph)
    packed, raw = make_params(k_params)

    fwd = jax.jit(gnn_family_forward)
    y = jax.block_until_ready(fwd(feats, adj, packed))
    assert y.shape == (BS, NUM_CLASSES) and y.dtype == jnp.float32
    assert bool(jnp.all(jnp.isfinite(y)))

    y_ref = reference_forward(feats, adj, raw)
    max_err = float(jnp.max(jnp.abs(y - y_ref)))
    assert bool(jnp.allclose(y, y_ref, rtol=3e-2, atol=3e-2)), max_err

    print("KERNEL_OK")
</pallas_src>

<mosaic_0001>
module attributes {stable_mosaic.version = 11 : i64} {
  func.func @gnn_family_kernel(%arg0: memref<80x2xf32, #tpu.memory_space<vmem>>, %arg1: memref<16x32xf32, #tpu.memory_space<vmem>>, %arg2: memref<3x32x32xf32, #tpu.memory_space<vmem>>, %arg3: memref<32x32xf32, #tpu.memory_space<vmem>>, %arg4: memref<160x8xf32, #tpu.memory_space<vmem>>, %arg5: memref<16x8xf32, #tpu.memory_space<vmem>>) attributes {dimension_semantics = [], scalar_prefetch = 0 : i64, scratch_operands = 0 : i64, tpu.core_type = #tpu.core_type<tc>} {
    %c0 = arith.constant 0 : index
    %c0_0 = arith.constant 0 : index
    %0 = vector.load %arg1[%c0, %c0_0] : memref<16x32xf32, #tpu.memory_space<vmem>>, vector<1x32xf32>
    %c1 = arith.constant 1 : index
    %c0_1 = arith.constant 0 : index
    %1 = vector.load %arg1[%c1, %c0_1] : memref<16x32xf32, #tpu.memory_space<vmem>>, vector<1x32xf32>
    %c5 = arith.constant 5 : index
    %c0_2 = arith.constant 0 : index
    %2 = vector.load %arg1[%c5, %c0_2] : memref<16x32xf32, #tpu.memory_space<vmem>>, vector<1x32xf32>
    %c6 = arith.constant 6 : index
    %c0_3 = arith.constant 0 : index
    %3 = vector.load %arg1[%c6, %c0_3] : memref<16x32xf32, #tpu.memory_space<vmem>>, vector<1x32xf32>
    %c7 = arith.constant 7 : index
    %c0_4 = arith.constant 0 : index
    %4 = vector.load %arg1[%c7, %c0_4] : memref<16x32xf32, #tpu.memory_space<vmem>>, vector<1x32xf32>
    %c8 = arith.constant 8 : index
    %c0_5 = arith.constant 0 : index
    %5 = vector.load %arg1[%c8, %c0_5] : memref<16x32xf32, #tpu.memory_space<vmem>>, vector<1x32xf32>
    %c9 = arith.constant 9 : index
    %c0_6 = arith.constant 0 : index
    %6 = vector.load %arg1[%c9, %c0_6] : memref<16x32xf32, #tpu.memory_space<vmem>>, vector<1x32xf32>
    %c10 = arith.constant 10 : index
    %c0_7 = arith.constant 0 : index
    %7 = vector.load %arg1[%c10, %c0_7] : memref<16x32xf32, #tpu.memory_space<vmem>>, vector<1x8xf32>
    %c0_8 = arith.constant 0 : index
    %c0_9 = arith.constant 0 : index
    %8 = vector.load %arg0[%c0_8, %c0_9] : memref<80x2xf32, #tpu.memory_space<vmem>>, vector<80x1xf32>
    %c0_10 = arith.constant 0 : index
    %c1_11 = arith.constant 1 : index
    %9 = vector.load %arg0[%c0_10, %c1_11] : memref<80x2xf32, #tpu.memory_space<vmem>>, vector<80x1xf32>
    %10 = vector.broadcast %8 : vector<80x1xf32> to vector<80x32xf32>
    %11 = vector.broadcast %0 : vector<1x32xf32> to vector<80x32xf32>
    %12 = arith.mulf %10, %11 : vector<80x32xf32>
    %13 = vector.broadcast %9 : vector<80x1xf32> to vector<80x32xf32>
    %14 = vector.broadcast %1 : vector<1x32xf32> to vector<80x32xf32>
    %15 = arith.mulf %13, %14 : vector<80x32xf32>
    %16 = arith.addf %12, %15 : vector<80x32xf32>
    %c0_12 = arith.constant 0 : index
    %c0_13 = arith.constant 0 : index
    %c0_14 = arith.constant 0 : index
    %17 = vector.load %arg2[%c0_12, %c0_13, %c0_14] : memref<3x32x32xf32, #tpu.memory_space<vmem>>, vector<1x32x32xf32>
    %18 = vector.shape_cast %17 : vector<1x32x32xf32> to vector<32x32xf32>
    %cst = arith.constant dense<0.000000e+00> : vector<80x32xf32>
    %19 = tpu.matmul %16, %18, %cst {dimension_numbers = #tpu.dot_dimension_numbers<[1], [0], [0], [1], [0, 0, 1, 1], [], []>} : vector<80x32xf32>, vector<32x32xf32>, vector<80x32xf32> -> vector<80x32xf32>
    %c2 = arith.constant 2 : index
    %c0_15 = arith.constant 0 : index
    %20 = vector.load %arg1[%c2, %c0_15] : memref<16x32xf32, #tpu.memory_space<vmem>>, vector<1x32xf32>
    %21 = vector.broadcast %20 : vector<1x32xf32> to vector<80x32xf32>
    %22 = arith.addf %19, %21 : vector<80x32xf32>
    %cst_16 = arith.constant 0.000000e+00 : f32
    %23 = vector.broadcast %cst_16 : f32 to vector<80x32xf32>
    %24 = arith.maximumf %22, %23 : vector<80x32xf32>
    %c1_17 = arith.constant 1 : index
    %c0_18 = arith.constant 0 : index
    %c0_19 = arith.constant 0 : index
    %25 = vector.load %arg2[%c1_17, %c0_18, %c0_19] : memref<3x32x32xf32, #tpu.memory_space<vmem>>, vector<1x32x32xf32>
    %26 = vector.shape_cast %25 : vector<1x32x32xf32> to vector<32x32xf32>
    %cst_20 = arith.constant dense<0.000000e+00> : vector<80x32xf32>
    %27 = tpu.matmul %24, %26, %cst_20 {dimension_numbers = #tpu.dot_dimension_numbers<[1], [0], [0], [1], [0, 0, 1, 1], [], []>} : vector<80x32xf32>, vector<32x32xf32>, vector<80x32xf32> -> vector<80x32xf32>
    %c3 = arith.constant 3 : index
    %c0_21 = arith.constant 0 : index
    %28 = vector.load %arg1[%c3, %c0_21] : memref<16x32xf32, #tpu.memory_space<vmem>>, vector<1x32xf32>
    %29 = vector.broadcast %28 : vector<1x32xf32> to vector<80x32xf32>
    %30 = arith.addf %27, %29 : vector<80x32xf32>
    %cst_22 = arith.constant 0.000000e+00 : f32
    %31 = vector.broadcast %cst_22 : f32 to vector<80x32xf32>
    %32 = arith.maximumf %30, %31 : vector<80x32xf32>
    %c2_23 = arith.constant 2 : index
    %c0_24 = arith.constant 0 : index
    %c0_25 = arith.constant 0 : index
    %33 = vector.load %arg2[%c2_23, %c0_24, %c0_25] : memref<3x32x32xf32, #tpu.memory_space<vmem>>, vector<1x32x32xf32>
    %34 = vector.shape_cast %33 : vector<1x32x32xf32> to vector<32x32xf32>
    %cst_26 = arith.constant dense<0.000000e+00> : vector<80x32xf32>
    %35 = tpu.matmul %32, %34, %cst_26 {dimension_numbers = #tpu.dot_dimension_numbers<[1], [0], [0], [1], [0, 0, 1, 1], [], []>} : vector<80x32xf32>, vector<32x32xf32>, vector<80x32xf32> -> vector<80x32xf32>
    %c4 = arith.constant 4 : index
    %c0_27 = arith.constant 0 : index
    %36 = vector.load %arg1[%c4, %c0_27] : memref<16x32xf32, #tpu.memory_space<vmem>>, vector<1x32xf32>
    %37 = vector.broadcast %36 : vector<1x32xf32> to vector<80x32xf32>
    %38 = arith.addf %35, %37 : vector<80x32xf32>
    %cst_28 = arith.constant 0.000000e+00 : f32
    %39 = vector.broadcast %cst_28 : f32 to vector<80x32xf32>
    %40 = arith.maximumf %38, %39 : vector<80x32xf32>
    %cst_29 = arith.constant dense<0.000000e+00> : vector<32xf32>
    %41 = vector.multi_reduction <add>, %40, %cst_29 [0] : vector<80x32xf32> to vector<32xf32>
    %42 = vector.shape_cast %41 : vector<32xf32> to vector<1x32xf32>
    %cst_30 = arith.constant 8.000000e+01 : f32
    %43 = vector.broadcast %cst_30 : f32 to vector<1x32xf32>
    %44 = arith.divf %42, %43 : vector<1x32xf32>
    %45 = vector.broadcast %44 : vector<1x32xf32> to vector<80x32xf32>
    %46 = arith.subf %40, %45 : vector<80x32xf32>
    %47 = vector.broadcast %44 : vector<1x32xf32> to vector<80x32xf32>
    %48 = arith.subf %40, %47 : vector<80x32xf32>
    %49 = arith.mulf %46, %48 : vector<80x32xf32>
    %cst_31 = arith.constant dense<0.000000e+00> : vector<32xf32>
    %50 = vector.multi_reduction <add>, %49, %cst_31 [0] : vector<80x32xf32> to vector<32xf32>
    %51 = vector.shape_cast %50 : vector<32xf32> to vector<1x32xf32>
    %cst_32 = arith.constant 8.000000e+01 : f32
    %52 = vector.broadcast %cst_32 : f32 to vector<1x32xf32>
    %53 = arith.divf %51, %52 : vector<1x32xf32>
    %54 = vector.broadcast %44 : vector<1x32xf32> to vector<80x32xf32>
    %55 = arith.subf %40, %54 : vector<80x32xf32>
    %cst_33 = arith.constant 9.99999974E-6 : f32
    %56 = vector.broadcast %cst_33 : f32 to vector<1x32xf32>
    %57 = arith.addf %53, %56 : vector<1x32xf32>
    %58 = math.rsqrt %57 : vector<1x32xf32>
    %59 = vector.broadcast %58 : vector<1x32xf32> to vector<80x32xf32>
    %60 = arith.mulf %55, %59 : vector<80x32xf32>
    %61 = vector.broadcast %2 : vector<1x32xf32> to vector<80x32xf32>
    %62 = arith.mulf %60, %61 : vector<80x32xf32>
    %63 = vector.broadcast %3 : vector<1x32xf32> to vector<80x32xf32>
    %64 = arith.addf %62, %63 : vector<80x32xf32>
    %cst_34 = arith.constant dense<0.000000e+00> : vector<80xf32>
    %65 = vector.multi_reduction <add>, %64, %cst_34 [1] : vector<80x32xf32> to vector<80xf32>
    %66 = vector.shape_cast %65 : vector<80xf32> to vector<80x1xf32>
    %cst_35 = arith.constant 3.200000e+01 : f32
    %67 = vector.broadcast %cst_35 : f32 to vector<80x1xf32>
    %68 = arith.divf %66, %67 : vector<80x1xf32>
    %69 = vector.broadcast %68 : vector<80x1xf32> to vector<80x32xf32>
    %70 = arith.subf %64, %69 : vector<80x32xf32>
    %71 = vector.broadcast %68 : vector<80x1xf32> to vector<80x32xf32>
    %72 = arith.subf %64, %71 : vector<80x32xf32>
    %73 = arith.mulf %70, %72 : vector<80x32xf32>
    %cst_36 = arith.constant dense<0.000000e+00> : vector<80xf32>
    %74 = vector.multi_reduction <add>, %73, %cst_36 [1] : vector<80x32xf32> to vector<80xf32>
    %75 = vector.shape_cast %74 : vector<80xf32> to vector<80x1xf32>
    %cst_37 = arith.constant 3.200000e+01 : f32
    %76 = vector.broadcast %cst_37 : f32 to vector<80x1xf32>
    %77 = arith.divf %75, %76 : vector<80x1xf32>
    %78 = vector.broadcast %68 : vector<80x1xf32> to vector<80x32xf32>
    %79 = arith.subf %64, %78 : vector<80x32xf32>
    %cst_38 = arith.constant 9.99999974E-6 : f32
    %80 = vector.broadcast %cst_38 : f32 to vector<80x1xf32>
    %81 = arith.addf %77, %80 : vector<80x1xf32>
    %82 = math.rsqrt %81 : vector<80x1xf32>
    %83 = vector.broadcast %82 : vector<80x1xf32> to vector<80x32xf32>
    %84 = arith.mulf %79, %83 : vector<80x32xf32>
    %85 = vector.broadcast %4 : vector<1x32xf32> to vector<80x32xf32>
    %86 = arith.mulf %84, %85 : vector<80x32xf32>
    %87 = vector.broadcast %5 : vector<1x32xf32> to vector<80x32xf32>
    %88 = arith.addf %86, %87 : vector<80x32xf32>
    %cst_39 = arith.constant 0.000000e+00 : f32
    %89 = vector.broadcast %cst_39 : f32 to vector<80x32xf32>
    %90 = arith.maximumf %88, %89 : vector<80x32xf32>
    %c0_40 = arith.constant 0 : index
    %c0_41 = arith.constant 0 : index
    %91 = vector.load %arg3[%c0_40, %c0_41] : memref<32x32xf32, #tpu.memory_space<vmem>>, vector<32x32xf32>
    %cst_42 = arith.constant dense<0.000000e+00> : vector<80x32xf32>
    %92 = tpu.matmul %90, %91, %cst_42 {dimension_numbers = #tpu.dot_dimension_numbers<[1], [0], [0], [1], [0, 0, 1, 1], [], []>} : vector<80x32xf32>, vector<32x32xf32>, vector<80x32xf32> -> vector<80x32xf32>
    %93 = vector.broadcast %6 : vector<1x32xf32> to vector<80x32xf32>
    %94 = arith.addf %92, %93 : vector<80x32xf32>
    %95 = vector.extract_strided_slice %94 {offsets = [0, 0], sizes = [16, 32], strides = [1, 1]} : vector<80x32xf32> to vector<16x32xf32>
    %96 = vector.extract_strided_slice %94 {offsets = [16, 0], sizes = [16, 32], strides = [1, 1]} : vector<80x32xf32> to vector<16x32xf32>
    %97 = vector.extract_strided_slice %94 {offsets = [32, 0], sizes = [16, 32], strides = [1, 1]} : vector<80x32xf32> to vector<16x32xf32>
    %98 = vector.extract_strided_slice %94 {offsets = [48, 0], sizes = [16, 32], strides = [1, 1]} : vector<80x32xf32> to vector<16x32xf32>
    %99 = vector.extract_strided_slice %94 {offsets = [64, 0], sizes = [16, 32], strides = [1, 1]} : vector<80x32xf32> to vector<16x32xf32>
    %100 = tpu.concatenate %95, %96, %97, %98, %99 in 1 : vector<16x32xf32>, vector<16x32xf32>, vector<16x32xf32>, vector<16x32xf32>, vector<16x32xf32> -> vector<16x160xf32>
    %c0_43 = arith.constant 0 : index
    %c0_44 = arith.constant 0 : index
    %101 = vector.load %arg4[%c0_43, %c0_44] : memref<160x8xf32, #tpu.memory_space<vmem>>, vector<160x8xf32>
    %cst_45 = arith.constant dense<0.000000e+00> : vector<16x8xf32>
    %102 = tpu.matmul %100, %101, %cst_45 {dimension_numbers = #tpu.dot_dimension_numbers<[1], [0], [0], [1], [0, 0, 1, 1], [], []>} : vector<16x160xf32>, vector<160x8xf32>, vector<16x8xf32> -> vector<16x8xf32>
    %103 = vector.broadcast %7 : vector<1x8xf32> to vector<16x8xf32>
    %104 = arith.addf %102, %103 : vector<16x8xf32>
    %c0_46 = arith.constant 0 : index
    %c0_47 = arith.constant 0 : index
    %105 = vector.load %arg5[%c0_46, %c0_47] : memref<16x8xf32, #tpu.memory_space<vmem>>, vector<16x8xf32>
    tpu.vector_store %arg5[%c0_46, %c0_47], %104 {strides = array<i32>} : memref<16x8xf32, #tpu.memory_space<vmem>>, vector<16x8xf32>,
    return
  }
}

</mosaic_0001>

<bundles_post_ra>
// kernel: gnn_family_forward.1
= control target key start
LH: loop header
LB: loop body
LE: loop exit
PB: predicated region body
PF: predicated region fallthrough
CT: control target
= control target key end

     0   :  { %v1548_v0 = vmov 0   ;;  %v1549_v6 = vmov 1   ;;  %vm175_vm0 = vcmask 261120   ;;  %s1551_s22 = smov 32   ;;  %s1552_s23 = smov 64   ;;  %vm1122_vm1 = vcmask 523264   ;;  %s1912_s0 = inlined_call_operand.vmem [shape: f32[80,2], index: 0, kind: input, shape index: {}]   ;;  %s1913_s2 = inlined_call_operand.vmem [shape: f32[3,32,32], index: 2, kind: input, shape index: {}]   ;;  %s1914_s1 = inlined_call_operand.vmem [shape: f32[16,32], index: 1, kind: input, shape index: {}]   ;;  %s1915_s3 = inlined_call_operand.vmem [shape: f32[32,32], index: 3, kind: input, shape index: {}]   ;;  %s1916_s4 = inlined_call_operand.vmem [shape: f32[160,8], index: 4, kind: input, shape index: {}]   ;;  %s1917_s5 = inlined_call_operand.vmem [shape: f32[16,8], index: 5, kind: output, shape index: {}]  }
   0x1   :  { %1523 = vset.pattern.permute.xlu1 %v1548_v0  ;;  %1521 = vset.pattern.permute.xlu0 %v1548_v0  ;;  %v29_v1 = vld [vmem:[%s1912_s0 + $0x8] sm:$0xff]  ;;  %v28_v2 = vld [vmem:[%s1912_s0] sm:$0xff]  ;;  %v168_v5 = vld [vmem:[%s1913_s2 + $0x10] sm:$0xff]  ;;  %vm1125_vm2 = vcmask 785408   ;;  %vm1233_vm3 = vcmask 64512  }
   0x2   :  { %45 = vperm.xlu1 %1523, %v29_v1   ;;  %40 = vperm.xlu0 %1521, %v28_v2   ;;  %v166_v3 = vld [vmem:[%s1913_s2] sm:$0xff]  ;;  %v167_v4 = vld [vmem:[%s1913_s2 + $0x8] sm:$0xff]  ;;  %v169_v8 = vld [vmem:[%s1913_s2 + $0x18] sm:$0xff] }
   0x3   :  { %v1449_v7 = vpack.c.bf16 %v167_v4, %v166_v3  ;;  %v1453_v9 = vpack.c.bf16 %v169_v8, %v168_v5  ;;  %v30_v10 = vld [vmem:[%s1912_s0 + $0x10] sm:$0xff]  ;;  %v31_v11 = vld [vmem:[%s1912_s0 + $0x18] sm:$0xff]  ;;  %v32_v12 = vld [vmem:[%s1912_s0 + $0x20] sm:$0xff] }
   0x4   :  { %v33_v13 = vld [vmem:[%s1912_s0 + $0x28] sm:$0xff]  ;;  %v34_v14 = vld [vmem:[%s1912_s0 + $0x30] sm:$0xff]  ;;  %v35_v15 = vld [vmem:[%s1912_s0 + $0x38] sm:$0xff] }
   0x5   :  { %1450 = vmatprep.subr.bf16.mxu0 %v1449_v7  ;;  %1511 = vmatprep.subr.bf16.mxu1 %v1449_v7  ;;  %v36_v16 = vld [vmem:[%s1912_s0 + $0x40] sm:$0xff]  ;;  %v37_v17 = vld [vmem:[%s1912_s0 + $0x48] sm:$0xff] }
   0x6   :  { %1524 = vset.pattern.permute.xlu1 %v1549_v6  ;;  %1522 = vset.pattern.permute.xlu0 %v1549_v6  ;;  %v1253_v18 = vld [vmem:[%s1913_s2 + $0x20] sm:$0xff]  ;;  %v1254_v19 = vld [vmem:[%s1913_s2 + $0x28] sm:$0xff] }
   0x7   :  { %107 = vperm.xlu1 %1524, %v29_v1   ;;  %103 = vperm.xlu0 %1522, %v28_v2   ;;  %v1457_v20 = vpack.c.bf16 %v1254_v19, %v1253_v18  ;;  %v1240_v23 = vld [vmem:[%s1914_s1] ss:$0 sm:$0xff]  ;;  %v1241_v24 = vld [vmem:[%s1914_s1 + $0x1] ss:$0 sm:$0xff] }
   0x8   :  { %1452 = vmatpush3.bf16.msra.mxu0 %v1449_v7  ;;  %1513 = vmatpush3.bf16.msra.mxu1 %v1449_v7 }
   0x9   :  { %1454 = vmatprep.subr.bf16.mxu0 %v1453_v9  ;;  %1512 = vmatprep.subr.bf16.mxu1 %v1453_v9 }
   0xb   :  { %1525 = vset.pattern.permute.xlu1 %v1548_v0  ;;  %111 = vperm.xlu0 %1522, %v30_v10  }
   0xc   :  { %50 = vperm.xlu1 %1525, %v30_v10   ;;  %1456 = vmatpush3.bf16.msra.mxu0 %v1453_v9  ;;  %v1256_v10 = vld [vmem:[%s1913_s2 + $0x38] sm:$0xff] }
   0xd   :  { %1514 = vmatpush3.bf16.msra.mxu1 %v1453_v9  ;;  %v1255_v9 = vld [vmem:[%s1913_s2 + $0x30] sm:$0xff] }
   0xe   :  { %1458 = vmatprep.subr.bf16.mxu1 %v1457_v20 }
   0xf   :  { %115 = vperm.xlu0 %1522, %v31_v11  }
  0x10   :  { %55 = vperm.xlu1 %1525, %v31_v11   ;;  %v1461_v11 = vpack.c.bf16 %v1256_v10, %v1255_v9 }
  0x13   :  { %119 = vperm.xlu0 %1522, %v32_v12  }
  0x14   :  { %60 = vperm.xlu1 %1525, %v32_v12   ;;  %v1268_v12 = vld [vmem:[%s1913_s2 + $0x40] sm:$0xff] }
  0x17   :  { %123 = vperm.xlu0 %1522, %v33_v13  }
  0x18   :  { %65 = vperm.xlu1 %1525, %v33_v13   ;;  %v1269_v13 = vld [vmem:[%s1913_s2 + $0x48] sm:$0xff] }
  0x1b   :  { %127 = vperm.xlu0 %1522, %v34_v14  }
  0x1c   :  { %70 = vperm.xlu1 %1525, %v34_v14   ;;  %v1465_v14 = vpack.c.bf16 %v1269_v13, %v1268_v12 }
  0x1e   :  { %1466 = vmatprep.subr.bf16.mxu0 %v1465_v14 }
  0x1f   :  { %131 = vperm.xlu0 %1522, %v35_v15  }
  0x20   :  { %75 = vperm.xlu1 %1525, %v35_v15   ;;  %v1242_v15 = vld [vmem:[%s1914_s1 + $0x2] ss:$0 sm:$0xff] }
  0x23   :  { %135 = vperm.xlu0 %1522, %v36_v16  }
  0x24   :  { %80 = vperm.xlu1 %1525, %v36_v16  }
  0x27   :  { %139 = vperm.xlu0 %1522, %v37_v17  }
  0x28   :  { %85 = vperm.xlu1 %1525, %v37_v17  }
  0x81   :  { %v46_v21 = vpop.permute.xlu1 %45  ;;  %v41_v22 = vpop.permute.xlu0 %40 }
  0x82   :  { %v93_v27 = vmul.f32 %v1240_v23, %v46_v21  ;;  %v92_v28 = vmul.f32 %v1240_v23, %v41_v22 }
  0x86   :  { %v108_v25 = vpop.permute.xlu1 %107  ;;  %v104_v26 = vpop.permute.xlu0 %103 }
  0x87   :  { %v147_v29 = vmul.f32 %v1241_v24, %v108_v25  ;;  %v146_v30 = vmul.f32 %v1241_v24, %v104_v26 }
  0x89   :  { %v157_v31 = vadd.f32 %v147_v29, %v93_v27  ;;  %v156_v32 = vadd.f32 %v146_v30, %v92_v28 }
  0x8a   :  { %v112_v33 = vpop.permute.xlu0 %111 }
  0x8b   :  { %v148_v34 = vmul.f32 %v1241_v24, %v112_v33  ;;  %v51_v35 = vpop.permute.xlu1 %50  ;;  %1365 = vmatprep.mubr.msk.f32.mxu0 %vm175_vm0, %v156_v32 }
  0x8c   :  { %v94_v36 = vmul.f32 %v1240_v23, %v51_v35  ;;  %1366 = vmatmul.mubr.msk.f32.vlgmr.msra.gmra.mrb[0].mxu0 %vm175_vm0, %v157_v31 }
  0x8d   :  { %1468 = vmatpush3.bf16.msra.mxu0 %v1465_v14 }
  0x8e   :  { %v158_v37 = vadd.f32 %v148_v34, %v94_v36  ;;  %v116_v38 = vpop.permute.xlu0 %115 }
  0x8f   :  { %v149_v39 = vmul.f32 %v1241_v24, %v116_v38  ;;  %v56_v40 = vpop.permute.xlu1 %55 }
  0x90   :  { %v95_v41 = vmul.f32 %v1240_v23, %v56_v40  ;;  %1368 = vmatprep.mubr.msk.f32.mxu0 %vm175_vm0, %v158_v37 }
  0x92   :  { %v159_v42 = vadd.f32 %v149_v39, %v95_v41  ;;  %v120_v43 = vpop.permute.xlu0 %119 }
  0x93   :  { %v150_v44 = vmul.f32 %v1241_v24, %v120_v43  ;;  %v61_v45 = vpop.permute.xlu1 %60 }
  0x94   :  { %v96_v46 = vmul.f32 %v1240_v23, %v61_v45  ;;  %1369 = vmatmul.mubr.msk.f32.gmra.mrb[2].mxu0 %vm175_vm0, %v159_v42 }
  0x96   :  { %v124_v47 = vpop.permute.xlu0 %123  ;;  %v160_v48 = vadd.f32 %v150_v44, %v96_v46  ;;  %v1270_v46 = vld [vmem:[%s1913_s2 + $0x50] sm:$0xff] }
  0x97   :  { %v151_v49 = vmul.f32 %v1241_v24, %v124_v47  ;;  %v66_v50 = vpop.permute.xlu1 %65  ;;  %v1271_v47 = vld [vmem:[%s1913_s2 + $0x58] sm:$0xff] }
  0x98   :  { %v97_v51 = vmul.f32 %v1240_v23, %v66_v50  ;;  %1371 = vmatprep.mubr.msk.f32.mxu1 %vm175_vm0, %v160_v48  ;;  %v1469_v48 = vpack.c.bf16 %v1271_v47, %v1270_v46 }
  0x9a   :  { %v161_v52 = vadd.f32 %v151_v49, %v97_v51  ;;  %v128_v53 = vpop.permute.xlu0 %127  ;;  %1470 = vmatprep.subr.bf16.mxu0 %v1469_v48  ;;  %v1257_v49 = vld [vmem:[%s1914_s1 + $0x3] ss:$0 sm:$0xff] }
  0x9b   :  { %v152_v54 = vmul.f32 %v1241_v24, %v128_v53  ;;  %v71_v55 = vpop.permute.xlu1 %70  ;;  %1472 = vmatpush3.bf16.msra.mxu0 %v1469_v48 }
  0x9c   :  { %v98_v56 = vmul.f32 %v1240_v23, %v71_v55  ;;  %1372 = vmatmul.mubr.msk.f32.vlgmr.msra.gmra.mrb[0].mxu1 %vm175_vm0, %v161_v52 }
  0x9d   :  { %1460 = vmatpush3.bf16.msra.mxu1 %v1457_v20 }
  0x9e   :  { %v162_v57 = vadd.f32 %v152_v54, %v98_v56  ;;  %v132_v58 = vpop.permute.xlu0 %131  ;;  %1462 = vmatprep.subr.bf16.mxu1 %v1461_v11 }
  0x9f   :  { %v153_v59 = vmul.f32 %v1241_v24, %v132_v58  ;;  %v76_v60 = vpop.permute.xlu1 %75 }
  0xa0   :  { %v99_v61 = vmul.f32 %v1240_v23, %v76_v60  ;;  %1374 = vmatprep.mubr.msk.f32.mxu1 %vm175_vm0, %v162_v57 }
  0xa1   :  { %1464 = vmatpush3.bf16.msra.mxu1 %v1461_v11 }
  0xa2   :  { %v163_v62 = vadd.f32 %v153_v59, %v99_v61  ;;  %v136_v63 = vpop.permute.xlu0 %135 }
  0xa3   :  { %v154_v0 = vmul.f32 %v1241_v24, %v136_v63  ;;  %v81_v1 = vpop.permute.xlu1 %80 }
  0xa4   :  { %v100_v2 = vmul.f32 %v1240_v23, %v81_v1  ;;  %1375 = vmatmul.mubr.msk.f32.gmra.mrb[2].mxu1 %vm175_vm0, %v163_v62 }
  0xa6   :  { %v164_v3 = vadd.f32 %v154_v0, %v100_v2  ;;  %v140_v4 = vpop.permute.xlu0 %139 }
  0xa7   :  { %v155_v5 = vmul.f32 %v1241_v24, %v140_v4  ;;  %v86_v6 = vpop.permute.xlu1 %85 }
  0xa8   :  { %v101_v7 = vmul.f32 %v1240_v23, %v86_v6  ;;  %1377 = vmatprep.mubr.msk.f32.mxu1 %vm175_vm0, %v164_v3 }
  0xaa   :  { %v165_v8 = vadd.f32 %v155_v5, %v101_v7 }
  0xac   :  { %1378 = vmatmul.mubr.msk.f32.gmra.mrb[4].mxu1 %vm175_vm0, %v165_v8 }
 0x15f   :  { %v1367_v16 = vpop.f32.mrb[0].mxu0 }
 0x160   :  { %v278_v17 = vadd.f32 %v1367_v16, %v1242_v15  ;;  %v272_v18 = vpop.f32.mrb[1].mxu0  ;;  %v1272_v16 = vld [vmem:[%s1914_s1 + $0x4] ss:$0 sm:$0xff] }
 0x161   :  { %v273_v19 = vadd.f32 %v1242_v15, %v272_v18 }
 0x162   :  { %v322_v21 = vmax.f32 %v278_v17, 0.0 }
 0x163   :  { %v321_v20 = vmax.f32 %v273_v19, 0.0 }
 0x165   :  { %1388 = vmatprep.mubr.msk.f32.mxu1 %vm175_vm0, %v321_v20 }
 0x166   :  { %1389 = vmatmul.mubr.msk.f32.vlgmr.msra.gmra.mrb[6].mxu1 %vm175_vm0, %v322_v21 }
 0x167   :  { %v1370_v22 = vpop.f32.mrb[2].mxu0 }
 0x168   :  { %v288_v23 = vadd.f32 %v1370_v22, %v1242_v15  ;;  %v282_v24 = vpop.f32.mrb[3].mxu0 }
 0x169   :  { %v283_v25 = vadd.f32 %v1242_v15, %v282_v24 }
 0x16a   :  { %v324_v27 = vmax.f32 %v288_v23, 0.0 }
 0x16b   :  { %v323_v26 = vmax.f32 %v283_v25, 0.0 }
 0x16d   :  { %1391 = vmatprep.mubr.msk.f32.mxu1 %vm175_vm0, %v323_v26 }
 0x16e   :  { %1392 = vmatmul.mubr.msk.f32.gmra.mrb[8].mxu1 %vm175_vm0, %v324_v27 }
 0x16f   :  { %v1373_v28 = vpop.f32.mrb[0].mxu1 }
 0x170   :  { %v298_v29 = vadd.f32 %v1373_v28, %v1242_v15  ;;  %v292_v30 = vpop.f32.mrb[1].mxu1 }
 0x171   :  { %v293_v31 = vadd.f32 %v1242_v15, %v292_v30 }
 0x172   :  { %v326_v33 = vmax.f32 %v298_v29, 0.0 }
 0x173   :  { %v325_v32 = vmax.f32 %v293_v31, 0.0 }
 0x175   :  { %1394 = vmatprep.mubr.msk.f32.mxu1 %vm175_vm0, %v325_v32 }
 0x176   :  { %1395 = vmatmul.mubr.msk.f32.gmra.mrb[10].mxu1 %vm175_vm0, %v326_v33 }
 0x177   :  { %v1376_v34 = vpop.f32.mrb[2].mxu1 }
 0x178   :  { %v308_v35 = vadd.f32 %v1376_v34, %v1242_v15  ;;  %v302_v36 = vpop.f32.mrb[3].mxu1 }
 0x179   :  { %v303_v37 = vadd.f32 %v1242_v15, %v302_v36 }
 0x17a   :  { %v328_v39 = vmax.f32 %v308_v35, 0.0 }
 0x17b   :  { %v327_v38 = vmax.f32 %v303_v37, 0.0 }
 0x17d   :  { %1397 = vmatprep.mubr.msk.f32.mxu1 %vm175_vm0, %v327_v38 }
 0x17e   :  { %1398 = vmatmul.mubr.msk.f32.gmra.mrb[12].mxu1 %vm175_vm0, %v328_v39 }
 0x17f   :  { %v1379_v40 = vpop.f32.mrb[4].mxu1 }
 0x180   :  { %v318_v41 = vadd.f32 %v1379_v40, %v1242_v15  ;;  %v312_v42 = vpop.f32.mrb[5].mxu1 }
 0x181   :  { %v313_v43 = vadd.f32 %v1242_v15, %v312_v42 }
 0x182   :  { %v330_v45 = vmax.f32 %v318_v41, 0.0 }
 0x183   :  { %v329_v44 = vmax.f32 %v313_v43, 0.0 }
 0x185   :  { %1400 = vmatprep.mubr.msk.f32.mxu1 %vm175_vm0, %v329_v44 }
 0x186   :  { %1401 = vmatmul.mubr.msk.f32.gmra.mrb[14].mxu1 %vm175_vm0, %v330_v45 }
 0x239   :  { %v1390_v50 = vpop.f32.mrb[6].mxu1 }
 0x23a   :  { %v443_v51 = vadd.f32 %v1390_v50, %v1257_v49  ;;  %v437_v52 = vpop.f32.mrb[7].mxu1 }
 0x23b   :  { %v438_v53 = vadd.f32 %v1257_v49, %v437_v52 }
 0x23c   :  { %v487_v55 = vmax.f32 %v443_v51, 0.0 }
 0x23d   :  { %v486_v54 = vmax.f32 %v438_v53, 0.0 }
 0x23f   :  { %1411 = vmatprep.mubr.msk.f32.mxu0 %vm175_vm0, %v486_v54 }
 0x240   :  { %1412 = vmatmul.mubr.msk.f32.vlgmr.msra.gmra.mrb[4].mxu0 %vm175_vm0, %v487_v55 }
 0x241   :  { %v1393_v56 = vpop.f32.mrb[8].mxu1 }
 0x242   :  { %v453_v57 = vadd.f32 %v1393_v56, %v1257_v49  ;;  %v447_v58 = vpop.f32.mrb[9].mxu1 }
 0x243   :  { %v448_v59 = vadd.f32 %v1257_v49, %v447_v58 }
 0x244   :  { %v489_v61 = vmax.f32 %v453_v57, 0.0 }
 0x245   :  { %v488_v60 = vmax.f32 %v448_v59, 0.0 }
 0x247   :  { %1414 = vmatprep.mubr.msk.f32.mxu0 %vm175_vm0, %v488_v60 }
 0x248   :  { %1415 = vmatmul.mubr.msk.f32.gmra.mrb[6].mxu0 %vm175_vm0, %v489_v61 }
 0x249   :  { %v1396_v62 = vpop.f32.mrb[10].mxu1 }
 0x24a   :  { %v463_v63 = vadd.f32 %v1396_v62, %v1257_v49  ;;  %v457_v0 = vpop.f32.mrb[11].mxu1 }
 0x24b   :  { %v458_v1 = vadd.f32 %v1257_v49, %v457_v0 }
 0x24c   :  { %v491_v3 = vmax.f32 %v463_v63, 0.0 }
 0x24d   :  { %v490_v2 = vmax.f32 %v458_v1, 0.0 }
 0x24f   :  { %1417 = vmatprep.mubr.msk.f32.mxu0 %vm175_vm0, %v490_v2 }
 0x250   :  { %1418 = vmatmul.mubr.msk.f32.gmra.mrb[8].mxu0 %vm175_vm0, %v491_v3 }
 0x251   :  { %v1399_v4 = vpop.f32.mrb[12].mxu1 }
 0x252   :  { %v473_v5 = vadd.f32 %v1399_v4, %v1257_v49  ;;  %v467_v6 = vpop.f32.mrb[13].mxu1 }
 0x253   :  { %v468_v7 = vadd.f32 %v1257_v49, %v467_v6 }
 0x254   :  { %v493_v9 = vmax.f32 %v473_v5, 0.0 }
 0x255   :  { %v492_v8 = vmax.f32 %v468_v7, 0.0 }
 0x257   :  { %1420 = vmatprep.mubr.msk.f32.mxu0 %vm175_vm0, %v492_v8 }
 0x258   :  { %1421 = vmatmul.mubr.msk.f32.gmra.mrb[10].mxu0 %vm175_vm0, %v493_v9 }
 0x259   :  { %v1402_v10 = vpop.f32.mrb[14].mxu1 }
 0x25a   :  { %v483_v11 = vadd.f32 %v1402_v10, %v1257_v49  ;;  %v477_v12 = vpop.f32.mrb[15].mxu1 }
 0x25b   :  { %v478_v13 = vadd.f32 %v1257_v49, %v477_v12 }
 0x25c   :  { %v495_v15 = vmax.f32 %v483_v11, 0.0 }
 0x25d   :  { %v494_v14 = vmax.f32 %v478_v13, 0.0 }
 0x25f   :  { %1423 = vmatprep.mubr.msk.f32.mxu0 %vm175_vm0, %v494_v14 }
 0x260   :  { %1424 = vmatmul.mubr.msk.f32.gmra.mrb[12].mxu0 %vm175_vm0, %v495_v15 }
 0x313   :  { %v1413_v17 = vpop.f32.mrb[4].mxu0 }
 0x314   :  { %v608_v18 = vadd.f32 %v1413_v17, %v1272_v16  ;;  %v602_v19 = vpop.f32.mrb[5].mxu0 }
 0x315   :  { %v603_v20 = vadd.f32 %v1272_v16, %v602_v19 }
 0x316   :  { %v652_v21 = vmax.f32 %v608_v18, 0.0 }
 0x317   :  { %v651_v22 = vmax.f32 %v603_v20, 0.0 }
 0x318   :  { %v662_v23 = vsel %vm175_vm0, %v652_v21, 0.0 }
 0x319   :  { %v661_v24 = vsel %vm175_vm0, %v651_v22, 0.0 }
 0x31a   :  { %v663_v25 = vadd.f32 %v662_v23, %v661_v24 }
 0x31b   :  { %v1416_v26 = vpop.f32.mrb[6].mxu0 }
 0x31c   :  { %v618_v27 = vadd.f32 %v1416_v26, %v1272_v16  ;;  %v612_v28 = vpop.f32.mrb[7].mxu0 }
 0x31d   :  { %v613_v29 = vadd.f32 %v1272_v16, %v612_v28 }
 0x31e   :  { %v654_v30 = vmax.f32 %v618_v27, 0.0 }
 0x31f   :  { %v653_v31 = vmax.f32 %v613_v29, 0.0 }
 0x320   :  { %v666_v34 = vsel %vm175_vm0, %v654_v30, 0.0 }
 0x321   :  { %v664_v32 = vsel %vm175_vm0, %v653_v31, 0.0 }
 0x322   :  { %v665_v33 = vadd.f32 %v664_v32, %v663_v25 }
 0x323   :  { %v1419_v35 = vpop.f32.mrb[8].mxu0 }
 0x324   :  { %v628_v36 = vadd.f32 %v1419_v35, %v1272_v16  ;;  %v622_v37 = vpop.f32.mrb[9].mxu0  ;;  %v667_v38 = vadd.f32 %v666_v34, %v665_v33 }
 0x325   :  { %v623_v39 = vadd.f32 %v1272_v16, %v622_v37 }
 0x326   :  { %v656_v40 = vmax.f32 %v628_v36, 0.0 }
 0x327   :  { %v655_v41 = vmax.f32 %v623_v39, 0.0 }
 0x328   :  { %v670_v44 = vsel %vm175_vm0, %v656_v40, 0.0 }
 0x329   :  { %v668_v42 = vsel %vm175_vm0, %v655_v41, 0.0 }
 0x32a   :  { %v669_v43 = vadd.f32 %v668_v42, %v667_v38 }
 0x32b   :  { %v1422_v45 = vpop.f32.mrb[10].mxu0 }
 0x32c   :  { %v638_v46 = vadd.f32 %v1422_v45, %v1272_v16  ;;  %v632_v47 = vpop.f32.mrb[11].mxu0  ;;  %v671_v48 = vadd.f32 %v670_v44, %v669_v43 }
 0x32d   :  { %v633_v49 = vadd.f32 %v1272_v16, %v632_v47 }
 0x32e   :  { %v658_v50 = vmax.f32 %v638_v46, 0.0 }
 0x32f   :  { %v657_v51 = vmax.f32 %v633_v49, 0.0 }
 0x330   :  { %v674_v54 = vsel %vm175_vm0, %v658_v50, 0.0 }
 0x331   :  { %v672_v52 = vsel %vm175_vm0, %v657_v51, 0.0 }
 0x332   :  { %v673_v53 = vadd.f32 %v672_v52, %v671_v48 }
 0x333   :  { %v1425_v55 = vpop.f32.mrb[12].mxu0 }
 0x334   :  { %v648_v56 = vadd.f32 %v1425_v55, %v1272_v16  ;;  %v642_v57 = vpop.f32.mrb[13].mxu0  ;;  %v675_v58 = vadd.f32 %v674_v54, %v673_v53 }
 0x335   :  { %v643_v59 = vadd.f32 %v1272_v16, %v642_v57  ;;  %v1283_v57 = vld [vmem:[%s1914_s1 + $0x5] ss:$0 sm:$0xff] }
 0x336   :  { %v660_v60 = vmax.f32 %v648_v56, 0.0 }
 0x337   :  { %v659_v61 = vmax.f32 %v643_v59, 0.0 }
 0x338   :  { %v678_v0 = vsel %vm175_vm0, %v660_v60, 0.0 }
 0x339   :  { %v676_v62 = vsel %vm175_vm0, %v659_v61, 0.0 }
 0x33a   :  { %v677_v63 = vadd.f32 %v676_v62, %v675_v58  ;;  %v1284_v62 = vld [vmem:[%s1914_s1 + $0x6] ss:$0 sm:$0xff] }
 0x33c   :  { %v679_v1 = vadd.f32 %v678_v0, %v677_v63 }
 0x33e   :  { %v680_v2 = vrot.slane %v679_v1, 4 }
 0x340   :  { %v681_v3 = vadd.f32 %v680_v2, %v679_v1 }
 0x342   :  { %v682_v4 = vrot.slane %v681_v3, 2 }
 0x344   :  { %v683_v5 = vadd.f32 %v682_v4, %v681_v3 }
 0x346   :  { %v684_v6 = vrot.slane %v683_v5, 1 }
 0x348   :  { %v685_v7 = vadd.f32 %v684_v6, %v683_v5 }
 0x34a   :  { %v687_v8 = vmul.f32 0.0125, %v685_v7 }
 0x34c   :  { %v688_v9 = vsub.f32 %v651_v22, %v687_v8  ;;  %v689_v10 = vsub.f32 %v652_v21, %v687_v8  ;;  %v690_v11 = vsub.f32 %v653_v31, %v687_v8  ;;  %v691_v12 = vsub.f32 %v654_v30, %v687_v8 }
 0x34d   :  { %v692_v13 = vsub.f32 %v655_v41, %v687_v8  ;;  %v693_v14 = vsub.f32 %v656_v40, %v687_v8  ;;  %v694_v15 = vsub.f32 %v657_v51, %v687_v8  ;;  %v695_v16 = vsub.f32 %v658_v50, %v687_v8 }
 0x34e   :  { %v696_v17 = vsub.f32 %v659_v61, %v687_v8  ;;  %v1705_v18 = vsub.f32 %v660_v60, %v687_v8  ;;  %v698_v19 = vmul.f32 %v688_v9, %v688_v9  ;;  %v699_v20 = vmul.f32 %v689_v10, %v689_v10 }
 0x34f   :  { %v700_v23 = vmul.f32 %v690_v11, %v690_v11  ;;  %v701_v24 = vmul.f32 %v691_v12, %v691_v12  ;;  %v702_v22 = vmul.f32 %v692_v13, %v692_v13  ;;  %v703_v29 = vmul.f32 %v693_v14, %v693_v14 }
 0x350   :  { %v708_v25 = vsel %vm175_vm0, %v698_v19, 0.0  ;;  %v709_v26 = vsel %vm175_vm0, %v699_v20, 0.0  ;;  %v704_v32 = vmul.f32 %v694_v15, %v694_v15  ;;  %v705_v35 = vmul.f32 %v695_v16, %v695_v16 }
 0x351   :  { %v710_v27 = vadd.f32 %v709_v26, %v708_v25  ;;  %v711_v21 = vsel %vm175_vm0, %v700_v23, 0.0  ;;  %v713_v30 = vsel %vm175_vm0, %v701_v24, 0.0  ;;  %v715_v33 = vsel %vm175_vm0, %v702_v22, 0.0 }
 0x352   :  { %v717_v36 = vsel %vm175_vm0, %v703_v29, 0.0  ;;  %v706_v38 = vmul.f32 %v696_v17, %v696_v17  ;;  %v719_v39 = vsel %vm175_vm0, %v704_v32, 0.0  ;;  %v707_v41 = vmul.f32 %v1705_v18, %v1705_v18 }
 0x353   :  { %v712_v28 = vadd.f32 %v711_v21, %v710_v27  ;;  %v721_v42 = vsel %vm175_vm0, %v705_v35, 0.0 }
 0x354   :  { %v723_v44 = vsel %vm175_vm0, %v706_v38, 0.0  ;;  %v725_v46 = vsel %vm175_vm0, %v707_v41, 0.0 }
 0x355   :  { %v714_v31 = vadd.f32 %v713_v30, %v712_v28 }
 0x357   :  { %v716_v34 = vadd.f32 %v715_v33, %v714_v31 }
 0x359   :  { %v718_v37 = vadd.f32 %v717_v36, %v716_v34 }
 0x35b   :  { %v720_v40 = vadd.f32 %v719_v39, %v718_v37 }
 0x35d   :  { %v722_v43 = vadd.f32 %v721_v42, %v720_v40 }
 0x35f   :  { %v724_v45 = vadd.f32 %v723_v44, %v722_v43 }
 0x361   :  { %v726_v47 = vadd.f32 %v725_v46, %v724_v45 }
 0x363   :  { %v727_v48 = vrot.slane %v726_v47, 4 }
 0x365   :  { %v728_v49 = vadd.f32 %v727_v48, %v726_v47 }
 0x367   :  { %v729_v50 = vrot.slane %v728_v49, 2 }
 0x369   :  { %v730_v51 = vadd.f32 %v729_v50, %v728_v49 }
 0x36b   :  { %v731_v52 = vrot.slane %v730_v51, 1 }
 0x36d   :  { %v732_v53 = vadd.f32 %v731_v52, %v730_v51 }
 0x36f   :  { %v733_v54 = vmul.f32 0.0125, %v732_v53 }
 0x371   :  { %v734_v55 = vadd.f32 1e-05, %v733_v54 }
 0x373   :  { %1526 = vrsqrt.f32 %v734_v55 }
 0x37d   :  { %v1527_v56 = vpop.eup %1526 }
 0x37e   :  { %v744_v58 = vmul.f32 %v1527_v56, %v696_v17  ;;  %v737_v59 = vmul.f32 %v1527_v56, %v689_v10  ;;  %v736_v60 = vmul.f32 %v1527_v56, %v688_v9  ;;  %v738_v61 = vmul.f32 %v1527_v56, %v690_v11 }
 0x37f   :  { %v739_v63 = vmul.f32 %v1527_v56, %v691_v12  ;;  %v740_v0 = vmul.f32 %v1527_v56, %v692_v13  ;;  %v741_v1 = vmul.f32 %v1527_v56, %v693_v14  ;;  %v742_v2 = vmul.f32 %v1527_v56, %v694_v15 }
 0x380   :  { %v751_v3 = vmul.f32 %v1283_v57, %v737_v59  ;;  %v750_v4 = vmul.f32 %v1283_v57, %v736_v60  ;;  %v752_v5 = vmul.f32 %v1283_v57, %v738_v61  ;;  %v743_v6 = vmul.f32 %v1527_v56, %v695_v16 }
 0x381   :  { %v753_v7 = vmul.f32 %v1283_v57, %v739_v63  ;;  %v754_v20 = vmul.f32 %v1283_v57, %v740_v0  ;;  %v755_v17 = vmul.f32 %v1283_v57, %v741_v1  ;;  %v745_v12 = vmul.f32 %v1527_v56, %v1705_v18 }
 0x382   :  { %v765_v8 = vadd.f32 %v1284_v62, %v751_v3  ;;  %v764_v19 = vadd.f32 %v1284_v62, %v750_v4  ;;  %v766_v11 = vadd.f32 %v1284_v62, %v752_v5  ;;  %v756_v13 = vmul.f32 %v1283_v57, %v742_v2 }
 0x383   :  { %v767_v23 = vadd.f32 %v1284_v62, %v753_v7  ;;  %v757_v14 = vmul.f32 %v1283_v57, %v743_v6  ;;  %v768_v24 = vadd.f32 %v1284_v62, %v754_v20  ;;  %v769_v25 = vadd.f32 %v1284_v62, %v755_v17 }
 0x384   :  { %v777_v9 = vsel %vm175_vm0, %v765_v8, 0.0  ;;  %v774_v10 = vsel %vm175_vm0, %v764_v19, 0.0  ;;  %v780_v15 = vsel %vm175_vm0, %v766_v11, 0.0  ;;  %v770_v26 = vadd.f32 %v1284_v62, %v756_v13 }
 0x385   :  { %778 = vadd.xlane.f32.xlu0 %v777_v9  ;;  %775 = vadd.xlane.f32.xlu1 %v774_v10  ;;  %v783_v16 = vsel %vm175_vm0, %v767_v23, 0.0  ;;  %v771_v27 = vadd.f32 %v1284_v62, %v757_v14  ;;  %v786_v22 = vsel %vm175_vm0, %v768_v24, 0.0  ;;  %v789_v21 = vsel %vm175_vm0, %v769_v25, 0.0 }
 0x386   :  { %v758_v28 = vmul.f32 %v1283_v57, %v744_v58  ;;  %v759_v29 = vmul.f32 %v1283_v57, %v745_v12  ;;  %v792_v18 = vsel %vm175_vm0, %v770_v26, 0.0 }
 0x387   :  { %v795_v30 = vsel %vm175_vm0, %v771_v27, 0.0 }
 0x388   :  { %v772_v31 = vadd.f32 %v1284_v62, %v758_v28  ;;  %v773_v32 = vadd.f32 %v1284_v62, %v759_v29 }
 0x389   :  { %781 = vadd.xlane.f32.xlu0 %v780_v15  ;;  %784 = vadd.xlane.f32.xlu1 %v783_v16 }
 0x38a   :  { %v798_v33 = vsel %vm175_vm0, %v772_v31, 0.0  ;;  %v801_v34 = vsel %vm175_vm0, %v773_v32, 0.0 }
 0x38d   :  { %787 = vadd.xlane.f32.xlu0 %v786_v22  ;;  %790 = vadd.xlane.f32.xlu1 %v789_v21  ;;  %v946_v22 = vld [vmem:[%s1915_s3 + $0x18] sm:$0xff] }
 0x391   :  { %793 = vadd.xlane.f32.xlu0 %v792_v18  ;;  %796 = vadd.xlane.f32.xlu1 %v795_v30 }
 0x395   :  { %799 = vadd.xlane.f32.xlu0 %v798_v33  ;;  %802 = vadd.xlane.f32.xlu1 %v801_v34 }
 0x412   :  { %v779_v35 = vpop.xlane.xlu0 %778  ;;  %v776_v36 = vpop.xlane.xlu1 %775 }
 0x413   :  { %v806_v37 = vmul.f32 0.03125, %v779_v35  ;;  %v805_v38 = vmul.f32 0.03125, %v776_v36 }
 0x415   :  { %v1736_v39 = vsub.f32 %v765_v8, %v806_v37  ;;  %v1738_v40 = vsub.f32 %v764_v19, %v805_v38 }
 0x416   :  { %v782_v41 = vpop.xlane.xlu0 %781  ;;  %v785_v42 = vpop.xlane.xlu1 %784 }
 0x417   :  { %v807_v43 = vmul.f32 0.03125, %v782_v41  ;;  %v808_v44 = vmul.f32 0.03125, %v785_v42  ;;  %v826_v45 = vmul.f32 %v1736_v39, %v1736_v39  ;;  %v825_v46 = vmul.f32 %v1738_v40, %v1738_v40 }
 0x419   :  { %v1744_v47 = vsub.f32 %v766_v11, %v807_v43  ;;  %v1746_v48 = vsub.f32 %v767_v23, %v808_v44  ;;  %v838_v49 = vsel %vm175_vm0, %v826_v45, 0.0  ;;  %v835_v50 = vsel %vm175_vm0, %v825_v46, 0.0 }
 0x41a   :  { %v788_v51 = vpop.xlane.xlu0 %787  ;;  %839 = vadd.xlane.f32.xlu1 %v838_v49  ;;  %836 = vadd.xlane.f32.xlu0 %v835_v50  ;;  %v791_v52 = vpop.xlane.xlu1 %790 }
 0x41b   :  { %v809_v53 = vmul.f32 0.03125, %v788_v51  ;;  %v810_v54 = vmul.f32 0.03125, %v791_v52  ;;  %v827_v55 = vmul.f32 %v1744_v47, %v1744_v47  ;;  %v828_v56 = vmul.f32 %v1746_v48, %v1746_v48 }
 0x41d   :  { %v1754_v57 = vsub.f32 %v768_v24, %v809_v53  ;;  %v1756_v58 = vsub.f32 %v769_v25, %v810_v54  ;;  %v841_v59 = vsel %vm175_vm0, %v827_v55, 0.0  ;;  %v844_v60 = vsel %vm175_vm0, %v828_v56, 0.0  ;;  %v943_v24 = vld [vmem:[%s1915_s3] sm:$0xff]  ;;  %v944_v25 = vld [vmem:[%s1915_s3 + $0x8] sm:$0xff] }
 0x41e   :  { %v794_v61 = vpop.xlane.xlu0 %793  ;;  %842 = vadd.xlane.f32.xlu0 %v841_v59  ;;  %845 = vadd.xlane.f32.xlu1 %v844_v60  ;;  %v797_v62 = vpop.xlane.xlu1 %796  ;;  %v1801_v54 = vld [vmem:[%s1914_s1 + $0x7] ss:$0 sm:$0xff] }
 0x41f   :  { %v811_v63 = vmul.f32 0.03125, %v794_v61  ;;  %v812_v0 = vmul.f32 0.03125, %v797_v62  ;;  %v829_v1 = vmul.f32 %v1754_v57, %v1754_v57  ;;  %v830_v2 = vmul.f32 %v1756_v58, %v1756_v58 }
 0x421   :  { %v1764_v3 = vsub.f32 %v770_v26, %v811_v63  ;;  %v1766_v4 = vsub.f32 %v771_v27, %v812_v0  ;;  %v847_v5 = vsel %vm175_vm0, %v829_v1, 0.0  ;;  %v850_v6 = vsel %vm175_vm0, %v830_v2, 0.0  ;;  %v945_v27 = vld [vmem:[%s1915_s3 + $0x10] sm:$0xff]  ;;  %v1286_v63 = vld [vmem:[%s1914_s1 + $0x8] ss:$0 sm:$0xff] }
 0x422   :  { %v800_v7 = vpop.xlane.xlu0 %799  ;;  %848 = vadd.xlane.f32.xlu0 %v847_v5  ;;  %851 = vadd.xlane.f32.xlu1 %v850_v6  ;;  %v803_v8 = vpop.xlane.xlu1 %802  ;;  %v1473_v26 = vpack.c.bf16 %v944_v25, %v943_v24  ;;  %v1477_v21 = vpack.c.bf16 %v946_v22, %v945_v27 }
 0x423   :  { %v813_v19 = vmul.f32 0.03125, %v800_v7  ;;  %v814_v20 = vmul.f32 0.03125, %v803_v8  ;;  %v831_v17 = vmul.f32 %v1764_v3, %v1764_v3  ;;  %v832_v9 = vmul.f32 %v1766_v4, %v1766_v4 }
 0x424   :  { %1474 = vmatprep.subr.bf16.mxu1 %v1473_v26 }
 0x425   :  { %v1774_v10 = vsub.f32 %v772_v31, %v813_v19  ;;  %v1776_v11 = vsub.f32 %v773_v32, %v814_v20  ;;  %v853_v23 = vsel %vm175_vm0, %v831_v17, 0.0  ;;  %v856_v12 = vsel %vm175_vm0, %v832_v9, 0.0  ;;  %1476 = vmatpush3.bf16.msra.mxu1 %v1473_v26 }
 0x426   :  { %854 = vadd.xlane.f32.xlu0 %v853_v23  ;;  %857 = vadd.xlane.f32.xlu1 %v856_v12 }
 0x427   :  { %v833_v13 = vmul.f32 %v1774_v10, %v1774_v10  ;;  %v834_v14 = vmul.f32 %v1776_v11, %v1776_v11  ;;  %1478 = vmatprep.subr.bf16.mxu1 %v1477_v21 }
 0x429   :  { %v859_v15 = vsel %vm175_vm0, %v833_v13, 0.0  ;;  %v862_v16 = vsel %vm175_vm0, %v834_v14, 0.0  ;;  %1480 = vmatpush3.bf16.msra.mxu1 %v1477_v21 }
 0x42a   :  { %860 = vadd.xlane.f32.xlu0 %v859_v15  ;;  %863 = vadd.xlane.f32.xlu1 %v862_v16 }
 0x4a7   :  { %v837_v28 = vpop.xlane.xlu0 %836  ;;  %v840_v29 = vpop.xlane.xlu1 %839 }
 0x4a8   :  { %v865_v18 = vmul.f32 0.03125, %v837_v28  ;;  %v866_v30 = vmul.f32 0.03125, %v840_v29 }
 0x4aa   :  { %v875_v31 = vadd.f32 1e-05, %v865_v18  ;;  %v876_v32 = vadd.f32 1e-05, %v866_v30 }
 0x4ab   :  { %v843_v33 = vpop.xlane.xlu0 %842  ;;  %v846_v34 = vpop.xlane.xlu1 %845 }
 0x4ac   :  { %1528 = vrsqrt.f32 %v875_v31  ;;  %v867_v35 = vmul.f32 0.03125, %v843_v33  ;;  %v868_v36 = vmul.f32 0.03125, %v846_v34 }
 0x4ad   :  { %1530 = vrsqrt.f32 %v876_v32 }
 0x4ae   :  { %v877_v37 = vadd.f32 1e-05, %v867_v35  ;;  %v878_v38 = vadd.f32 1e-05, %v868_v36 }
 0x4af   :  { %v849_v41 = vpop.xlane.xlu0 %848  ;;  %v852_v42 = vpop.xlane.xlu1 %851 }
 0x4b0   :  { %1532 = vrsqrt.f32 %v877_v37  ;;  %v869_v43 = vmul.f32 0.03125, %v849_v41  ;;  %v870_v44 = vmul.f32 0.03125, %v852_v42 }
 0x4b1   :  { %1534 = vrsqrt.f32 %v878_v38 }
 0x4b2   :  { %v879_v45 = vadd.f32 1e-05, %v869_v43  ;;  %v880_v46 = vadd.f32 1e-05, %v870_v44 }
 0x4b3   :  { %v855_v49 = vpop.xlane.xlu0 %854  ;;  %v858_v50 = vpop.xlane.xlu1 %857 }
 0x4b4   :  { %1536 = vrsqrt.f32 %v879_v45  ;;  %v871_v51 = vmul.f32 0.03125, %v855_v49  ;;  %v872_v52 = vmul.f32 0.03125, %v858_v50 }
 0x4b5   :  { %1538 = vrsqrt.f32 %v880_v46 }
 0x4b6   :  { %v1529_v53 = vpop.eup %1528  ;;  %v881_v55 = vadd.f32 1e-05, %v871_v51  ;;  %v882_v56 = vadd.f32 1e-05, %v872_v52  ;;  %v1129_v51 = vld [vmem:[%s1916_s4 + $0x8] sm:$0xff]  ;;  %v1130_v52 = vld [vmem:[%s1916_s4 + $0x10] sm:$0xff] }
 0x4b7   :  { %v1531_v59 = vpop.eup %1530  ;;  %v861_v60 = vpop.xlane.xlu0 %860  ;;  %v895_v62 = vmul.f32 %v1529_v53, %v1738_v40 }
 0x4b8   :  { %v864_v61 = vpop.xlane.xlu1 %863  ;;  %v896_v0 = vmul.f32 %v1531_v59, %v1736_v39  ;;  %1540 = vrsqrt.f32 %v881_v55  ;;  %v873_v1 = vmul.f32 0.03125, %v861_v60  ;;  %v1133_v59 = vld [vmem:[%s1916_s4 + $0x28] sm:$0xff] }
 0x4b9   :  { %v874_v2 = vmul.f32 0.03125, %v864_v61  ;;  %1542 = vrsqrt.f32 %v882_v56  ;;  %v909_v5 = vmul.f32 %v1801_v54, %v895_v62  ;;  %v1132_v56 = vld [vmem:[%s1916_s4 + $0x20] sm:$0xff]  ;;  %v1134_v61 = vld [vmem:[%s1916_s4 + $0x30] sm:$0xff]  ;;  %v1135_v62 = vld [vmem:[%s1916_s4 + $0x38] sm:$0xff] }
 0x4ba   :  { %v1533_v6 = vpop.eup %1532  ;;  %v910_v7 = vmul.f32 %v1801_v54, %v896_v0  ;;  %v883_v8 = vadd.f32 1e-05, %v873_v1  ;;  %v1488_v60 = vpack.c.bf16 %v1133_v59, %v1132_v56  ;;  %v1136_v0 = vld [vmem:[%s1916_s4 + $0x40] sm:$0xff]  ;;  %v1137_v1 = vld [vmem:[%s1916_s4 + $0x48] sm:$0xff] }
 0x4bb   :  { %v884_v19 = vadd.f32 1e-05, %v874_v2  ;;  %v1535_v20 = vpop.eup %1534  ;;  %v923_v17 = vadd.f32 %v1286_v63, %v909_v5  ;;  %v897_v40 = vmul.f32 %v1533_v6, %v1744_v47  ;;  %v1494_v2 = vpack.c.bf16 %v1137_v1, %v1136_v0  ;;  %v1138_v5 = vld [vmem:[%s1916_s4 + $0x50] sm:$0xff]  ;;  %v1139_v6 = vld [vmem:[%s1916_s4 + $0x58] sm:$0xff] }
 0x4bc   :  { %v924_v9 = vadd.f32 %v1286_v63, %v910_v7  ;;  %1544 = vrsqrt.f32 %v883_v8  ;;  %v898_v23 = vmul.f32 %v1535_v20, %v1746_v48  ;;  %v1497_v7 = vpack.c.bf16 %v1139_v6, %v1138_v5  ;;  %v1140_v8 = vld [vmem:[%s1916_s4 + $0x60] sm:$0xff] }
 0x4bd   :  { %1546 = vrsqrt.f32 %v884_v19  ;;  %v933_v39 = vmax.f32 %v923_v17, 0.0  ;;  %v911_v12 = vmul.f32 %v1801_v54, %v897_v40  ;;  %v1141_v19 = vld [vmem:[%s1916_s4 + $0x68] sm:$0xff]  ;;  %v1142_v17 = vld [vmem:[%s1916_s4 + $0x70] sm:$0xff]  ;;  %v1143_v40 = vld [vmem:[%s1916_s4 + $0x78] sm:$0xff] }
 0x4be   :  { %v1537_v13 = vpop.eup %1536  ;;  %v934_v14 = vmax.f32 %v924_v9, 0.0  ;;  %v912_v15 = vmul.f32 %v1801_v54, %v898_v23  ;;  %v1500_v20 = vpack.c.bf16 %v1141_v19, %v1140_v8  ;;  %v1503_v9 = vpack.c.bf16 %v1143_v40, %v1142_v17  ;;  %v1144_v23 = vld [vmem:[%s1916_s4 + $0x80] sm:$0xff] }
 0x4bf   :  { %v1539_v16 = vpop.eup %1538  ;;  %1434 = vmatprep.mubr.msk.f32.mxu1 %vm175_vm0, %v933_v39  ;;  %v925_v24 = vadd.f32 %v1286_v63, %v911_v12  ;;  %v899_v25 = vmul.f32 %v1537_v13, %v1754_v57  ;;  %v1145_v39 = vld [vmem:[%s1916_s4 + $0x88] sm:$0xff] }
 0x4c0   :  { %1435 = vmatmul.mubr.msk.f32.vlgmr.msra.gmra.mrb[16].mxu1 %vm175_vm0, %v934_v14  ;;  %v926_v47 = vadd.f32 %v1286_v63, %v912_v15  ;;  %v900_v26 = vmul.f32 %v1539_v16, %v1756_v58  ;;  %v1506_v12 = vpack.c.bf16 %v1145_v39, %v1144_v23  ;;  %v1287_v13 = vld [vmem:[%s1914_s1 + $0x9] ss:$0 sm:$0xff]  ;;  %v1146_v14 = vld [vmem:[%s1916_s4 + $0x90] sm:$0xff]  ;;  %v1147_v15 = vld [vmem:[%s1916_s4 + $0x98] sm:$0xff] }
 0x4c1   :  { %v935_v48 = vmax.f32 %v925_v24, 0.0  ;;  %v913_v27 = vmul.f32 %v1801_v54, %v899_v25  ;;  %v1509_v24 = vpack.c.bf16 %v1147_v15, %v1146_v14 }
 0x4c2   :  { %v1541_v22 = vpop.eup %1540  ;;  %v936_v21 = vmax.f32 %v926_v47, 0.0  ;;  %v914_v28 = vmul.f32 %v1801_v54, %v900_v26 }
 0x4c3   :  { %v1543_v29 = vpop.eup %1542  ;;  %1437 = vmatprep.mubr.msk.f32.mxu1 %vm175_vm0, %v935_v48  ;;  %v927_v18 = vadd.f32 %v1286_v63, %v913_v27  ;;  %v901_v30 = vmul.f32 %v1541_v22, %v1764_v3 }
 0x4c4   :  { %1438 = vmatmul.mubr.msk.f32.gmra.mrb[18].mxu1 %vm175_vm0, %v936_v21  ;;  %v928_v57 = vadd.f32 %v1286_v63, %v914_v28  ;;  %v902_v31 = vmul.f32 %v1543_v29, %v1766_v4 }
 0x4c5   :  { %v937_v32 = vmax.f32 %v927_v18, 0.0  ;;  %v915_v58 = vmul.f32 %v1801_v54, %v901_v30 }
 0x4c6   :  { %v1545_v33 = vpop.eup %1544  ;;  %v938_v34 = vmax.f32 %v928_v57, 0.0  ;;  %v916_v35 = vmul.f32 %v1801_v54, %v902_v31 }
 0x4c7   :  { %v1547_v36 = vpop.eup %1546  ;;  %1440 = vmatprep.mubr.msk.f32.mxu1 %vm175_vm0, %v937_v32  ;;  %v929_v37 = vadd.f32 %v1286_v63, %v915_v58  ;;  %v903_v38 = vmul.f32 %v1545_v33, %v1774_v10  ;;  %v1550_v10 = vmov 0.0|0.0  }
 0x4c8   :  { %1441 = vmatmul.mubr.msk.f32.gmra.mrb[20].mxu1 %vm175_vm0, %v938_v34  ;;  %v930_v3 = vadd.f32 %v1286_v63, %v916_v35  ;;  %v904_v41 = vmul.f32 %v1547_v36, %v1776_v11  ;;  %1481 = vmatprep.subr.bf16.mxu0 %v1550_v10  ;;  %v1128_v11 = vld [vmem:[%s1916_s4] sm:$0xff] }
 0x4c9   :  { %v939_v42 = vmax.f32 %v929_v37, 0.0  ;;  %v917_v4 = vmul.f32 %v1801_v54, %v903_v38  ;;  %v1482_v53 = vpack.c.bf16 %v1129_v51, %v1128_v11 }
 0x4ca   :  { %v940_v43 = vmax.f32 %v930_v3, 0.0  ;;  %v918_v44 = vmul.f32 %v1801_v54, %v904_v41  ;;  %v1131_v54 = vld [vmem:[%s1916_s4 + $0x18] sm:$0xff]  ;;  %s1553_s4 = smov 96  }
 0x4cb   :  { %1443 = vmatprep.mubr.msk.f32.mxu1 %vm175_vm0, %v939_v42  ;;  %v931_v45 = vadd.f32 %v1286_v63, %v917_v4  ;;  %1483 = vmatpush1.bf16.msra.mxu0 %v1482_v53  ;;  %v1485_v55 = vpack.c.bf16 %v1131_v54, %v1130_v52 }
 0x4cc   :  { %1444 = vmatmul.mubr.msk.f32.gmra.mrb[22].mxu1 %vm175_vm0, %v940_v43  ;;  %v932_v46 = vadd.f32 %v1286_v63, %v918_v44  ;;  %1484 = vmatprep.subr.bf16.mxu0 %v1550_v10  ;;  %v1491_v63 = vpack.c.bf16 %v1135_v62, %v1134_v61 }
 0x4cd   :  { %v941_v49 = vmax.f32 %v931_v45, 0.0 }
 0x4ce   :  { %v942_v50 = vmax.f32 %v932_v46, 0.0 }
 0x4cf   :  { %1446 = vmatprep.mubr.msk.f32.mxu1 %vm175_vm0, %v941_v49  ;;  %1486 = vmatpush1.bf16.msra.mxu0 %v1485_v55 }
 0x4d0   :  { %1447 = vmatmul.mubr.msk.f32.gmra.mrb[24].mxu1 %vm175_vm0, %v942_v50  ;;  %1487 = vmatprep.subr.bf16.mxu0 %v1550_v10 }
 0x4d3   :  { %1489 = vmatpush1.bf16.msra.mxu0 %v1488_v60 }
 0x4d4   :  { %1490 = vmatprep.subr.bf16.mxu0 %v1550_v10 }
 0x4d7   :  { %1492 = vmatpush1.bf16.msra.mxu0 %v1491_v63 }
 0x4d8   :  { %1493 = vmatprep.subr.bf16.mxu0 %v1550_v10 }
 0x4db   :  { %1495 = vmatpush1.bf16.msra.mxu0 %v1494_v2 }
 0x4dc   :  { %1496 = vmatprep.subr.bf16.mxu0 %v1550_v10 }
 0x4df   :  { %1498 = vmatpush1.bf16.msra.mxu0 %v1497_v7 }
 0x4e0   :  { %1499 = vmatprep.subr.bf16.mxu0 %v1550_v10 }
 0x4e3   :  { %1501 = vmatpush1.bf16.msra.mxu0 %v1500_v20 }
 0x4e4   :  { %1502 = vmatprep.subr.bf16.mxu0 %v1550_v10 }
 0x4e7   :  { %1504 = vmatpush1.bf16.msra.mxu0 %v1503_v9 }
 0x4e8   :  { %1505 = vmatprep.subr.bf16.mxu0 %v1550_v10 }
 0x4eb   :  { %1507 = vmatpush1.bf16.msra.mxu0 %v1506_v12 }
 0x4ec   :  { %1508 = vmatprep.subr.bf16.mxu0 %v1550_v10  ;;  %v1298_v10 = vld [vmem:[%s1914_s1 + $0xa] ss:$0 sm:$0xff] }
 0x4ef   :  { %1510 = vmatpush1.bf16.msra.mxu0 %v1509_v24 }
 0x593   :  { %v1436_v16 = vpop.f32.mrb[16].mxu1 }
 0x594   :  { %v1053_v25 = vadd.f32 %v1436_v16, %v1287_v13  ;;  %v1047_v47 = vpop.f32.mrb[17].mxu1 }
 0x595   :  { %v1048_v26 = vadd.f32 %v1287_v13, %v1047_v47 }
 0x597   :  { %v1439_v48 = vpop.f32.mrb[18].mxu1 }
 0x598   :  { %v1057_v27 = vpop.f32.mrb[19].mxu1  ;;  %v1063_v29 = vadd.f32 %v1439_v48, %v1287_v13 }
 0x599   :  { %v1058_v22 = vadd.f32 %v1287_v13, %v1057_v27 }
 0x59b   :  { %1098 = vrot.lane.b32.xlu0 %v1058_v22, %s1551_s22  ;;  %v1442_v21 = vpop.f32.mrb[20].mxu1 }
 0x59c   :  { %v1067_v28 = vpop.f32.mrb[21].mxu1  ;;  %v1073_v35 = vadd.f32 %v1442_v21, %v1287_v13 }
 0x59d   :  { %v1068_v18 = vadd.f32 %v1287_v13, %v1067_v28 }
 0x59f   :  { %1100 = vrot.lane.b32.xlu0 %v1063_v29, %s1551_s22  ;;  %1106 = vrot.lane.b32.xlu1 %v1068_v18, %s1552_s23  ;;  %v1445_v30 = vpop.f32.mrb[22].mxu1 }
 0x5a0   :  { %v1083_v57 = vadd.f32 %v1445_v30, %v1287_v13  ;;  %v1077_v31 = vpop.f32.mrb[23].mxu1 }
 0x5a1   :  { %v1078_v32 = vadd.f32 %v1287_v13, %v1077_v31 }
 0x5a3   :  { %1116 = vrot.lane.b32.xlu0 %v1083_v57, %s1553_s4  ;;  %1114 = vrot.lane.b32.xlu1 %v1078_v32, %s1553_s4  ;;  %v1448_v58 = vpop.f32.mrb[24].mxu1 }
 0x5a4   :  { %v1093_v33 = vadd.f32 %v1448_v58, %v1287_v13  ;;  %v1087_v34 = vpop.f32.mrb[25].mxu1 }
 0x5a5   :  { %v1088_v36 = vadd.f32 %v1287_v13, %v1087_v34 }
 0x5a7   :  { %1108 = vrot.lane.b32.xlu1 %v1073_v35, %s1552_s23  ;;  %1299 = vmatprep.mubr.msk.f32.mxu0 %vm175_vm0, %v1088_v36 }
 0x60d   :  { %v1099_v37 = vpop.permute.xlu0 %1098 }
 0x60e   :  { %v1120_v3 = vsel %vm175_vm0, %v1048_v26, %v1099_v37 }
 0x611   :  { %v1107_v38 = vpop.permute.xlu1 %1106  ;;  %v1101_v41 = vpop.permute.xlu0 %1100 }
 0x612   :  { %v1123_v42 = vsel %vm1122_vm1, %v1120_v3, %v1107_v38  ;;  %v1121_v44 = vsel %vm175_vm0, %v1053_v25, %v1101_v41 }
 0x615   :  { %v1115_v4 = vpop.permute.xlu1 %1114  ;;  %v1117_v46 = vpop.permute.xlu0 %1116 }
 0x616   :  { %v1126_v43 = vsel %vm1125_vm2, %v1123_v42, %v1115_v4 }
 0x617   :  { %1223 = vmatmul.mubr.f32.vlgmr.msra.gmra.mrb[14].mxu0 %v1126_v43 }
 0x618   :  { %1300 = vmatprep.mubr.msk.f32.mxu0 %vm175_vm0, %v1093_v33 }
 0x619   :  { %v1109_v45 = vpop.permute.xlu1 %1108 }
 0x61a   :  { %v1124_v49 = vsel %vm1122_vm1, %v1121_v44, %v1109_v45 }
 0x61b   :  { %v1127_v50 = vsel %vm1125_vm2, %v1124_v49, %v1117_v46 }
 0x61c   :  { %1228 = vmatmul.mubr.f32.gmra.mrb[16].mxu0 %v1127_v50 }
 0x6ea   :  { %v1224_v11 = vpop.f32.mrb[14].mxu0 }
 0x6eb   :  { %v1225_v51 = vadd.f32 %v1298_v10, %v1224_v11  ;;  %v1226_v52 = vpop.f32.mrb[15].mxu0 }
 0x6ed   :  { %1234 = vst.msk [vmem:[%s1917_s5] sm:$0xff] %vm1233_vm3, %v1225_v51 }
 0x6ef   :  { %v1229_v53 = vpop.f32.mrb[16].mxu0 }
 0x6f0   :  { %v1230_v54 = vadd.f32 %v1298_v10, %v1229_v53  ;;  %v1231_v55 = vpop.f32.mrb[17].mxu0 }
 0x6f2   :  { %1235 = vst.msk [vmem:[%s1917_s5 + $0x8] sm:$0xff] %vm1233_vm3, %v1230_v54 }

</bundles_post_ra>
